<compile_context>
chip_gen: v6e
topology: v6e:2x2x1
jax: 0.10.0
libtpu: 0.0.40
codegen_flags: <defaults>
</compile_context>

<pallas_src>
import jax
import jax.numpy as jnp
from jax.experimental import pallas as pl
from jax.experimental.pallas import tpu as pltpu


def soft_dot_attention_kernel(inp_ref, ctx_ref, w_in_t_ref, w_out_a_ref,
                              w_out_b_ref, h_ref, attn_ref):
    x = inp_ref[...]                                   # (TB, D)
    ctx = ctx_ref[...]                                 # (TB, S, D)

    # target = linear_in(input) -> (TB, D); weight pre-transposed in wrapper (MXU).
    target = jnp.dot(x, w_in_t_ref[...], preferred_element_type=jnp.float32)

    # attn logits: VPU multiply + lane (last-axis) reduce -> (TB, S) in f32.
    # (avoids TB degenerate N=1 MXU matvecs; hides under the ctx DMA stream)
    logits = jnp.sum(ctx * target[:, None, :], axis=-1)

    # Softmax over the source axis, exact normalization in f32.
    # NOTE: rows of a padded last batch block run softmax on garbage; Pallas
    # discards those outputs, harmless.
    m = jnp.max(logits, axis=-1, keepdims=True)
    e = jnp.exp(logits - m)
    attn = e / jnp.sum(e, axis=-1, keepdims=True)

    # weighted_context: VPU multiply + sublane (S-axis) reduce -> (TB, D) in f32.
    weighted = jnp.sum(attn[:, :, None] * ctx, axis=1)

    # linear_out(cat([weighted_context, input], 1)) == weighted @ Wa + x @ Wb
    # (two MXU matmuls into one f32 accumulator; no concatenate copy).
    pre = jnp.dot(weighted.astype(w_out_a_ref.dtype), w_out_a_ref[...],
                  preferred_element_type=jnp.float32)
    pre = pre + jnp.dot(x, w_out_b_ref[...], preferred_element_type=jnp.float32)

    h_ref[...] = jnp.tanh(pre).astype(h_ref.dtype)
    attn_ref[...] = attn.astype(attn_ref.dtype)


def _vmem_capacity_bytes():
    """Physical VMEM per TensorCore; conservative fallback if query unavailable."""
    try:
        return int(pltpu.get_tpu_info().vmem_capacity_bytes)
    except Exception:
        return 64 * 1024 * 1024            # v7x per-TC size (smallest generation)


def _pick_batch_tile(B, S, D, in_itemsize, max_tile=512):
    """Largest sublane-aligned batch tile whose working set fits ~70% of VMEM."""
    cap = _vmem_capacity_bytes()
    budget = int(cap * 0.70)               # headroom for Mosaic internal scratch

    # Double-buffered weight blocks (constant-index blocks still get 2 buffers).
    weight_bytes = 3 * 2 * D * D * in_itemsize
    # Per batch-row: pipelined (x2) in/out buffers + f32 intermediates
    # (one (S,D) elementwise product tile + logits/e/attn + target/weighted/pre).
    per_row = (2 * in_itemsize * (S * D + 2 * D + S)
               + 4 * (S * D + 3 * S + 4 * D))
    avail = max(budget - weight_bytes, 8 * per_row)

    tb = min(max_tile, avail // per_row)
    tb = max(8, (tb // 8) * 8)

    if B <= 8:
        tb = B                              # full-dim block is always legal
    elif tb >= B:
        if B >= 16:
            # Keep >=2 grid steps so the "parallel" axis uses both TensorCores
            # on v7x (negligible cost on single-core v5e/v6e).
            half = -(-B // 2)
            tb = max(8, ((half + 7) // 8) * 8)
        else:
            tb = B

    vmem_limit = int(min(cap - (2 << 20), max(budget, 32 << 20)))
    return tb, vmem_limit


def soft_dot_attention(inp, ctx, w_in, w_out, *, batch_tile=None):
    B, D = inp.shape
    Bc, S, Dc = ctx.shape
    assert Bc == B and Dc == D
    assert w_in.shape == (D, D)
    assert w_out.shape == (D, 2 * D)

    # One-time layout plumbing (fused by XLA): transpose linear_in, split +
    # transpose linear_out so the kernel never transposes or concatenates.
    w_in_t = w_in.T                  # (D, D): target = x @ w_in_t
    w_out_a = w_out[:, :D].T         # (D, D): multiplies weighted_context
    w_out_b = w_out[:, D:].T         # (D, D): multiplies input

    itemsize = jnp.dtype(inp.dtype).itemsize
    auto_tb, vmem_limit = _pick_batch_tile(B, S, D, itemsize)
    tb = auto_tb if batch_tile is None else min(batch_tile, B)
    grid = (pl.cdiv(B, tb),)

    # TODO(synk): for D >= 1024 pass the weights with a no-grid full-array VMEM
    # spec (memory_space=pltpu.MemorySpace.VMEM) to skip the 2x block buffering.
    weight_spec = pl.BlockSpec((D, D), lambda b: (0, 0))

    # TODO(synk): for very large S*D, add a second ("arbitrary") grid axis over S
    # with an online-softmax accumulator instead of holding a (tb, S, D) block.
    # TODO(synk): for production shapes, pad S and D to multiples of 128 in the
    # wrapper so the attn/h stores stay lane-dense (unmasked vst), and consider
    # casting ctx/weights to bf16 (kernel math already accumulates in f32).
    return pl.pallas_call(
        soft_dot_attention_kernel,
        out_shape=(
            jax.ShapeDtypeStruct((B, D), inp.dtype),   # h_tilde
            jax.ShapeDtypeStruct((B, S), inp.dtype),   # attn
        ),
        grid=grid,
        in_specs=[
            pl.BlockSpec((tb, D), lambda b: (b, 0)),        # input
            pl.BlockSpec((tb, S, D), lambda b: (b, 0, 0)),  # context (pipelined)
            weight_spec,                                    # w_in_t
            weight_spec,                                    # w_out_a
            weight_spec,                                    # w_out_b
        ],
        out_specs=(
            pl.BlockSpec((tb, D), lambda b: (b, 0)),
            pl.BlockSpec((tb, S), lambda b: (b, 0)),
        ),
        compiler_params=pltpu.CompilerParams(
            dimension_semantics=("parallel",),              # shard batch tiles over TCs
            vmem_limit_bytes=vmem_limit,
        ),
    )(inp, ctx, w_in_t, w_out_a, w_out_b)


def _reference(inp, ctx, w_in, w_out):
    target = inp @ w_in.T
    logits = jnp.einsum('bsd,bd->bs', ctx, target)
    attn = jax.nn.softmax(logits, axis=-1)
    weighted = jnp.einsum('bs,bsd->bd', attn, ctx)
    h_cat = jnp.concatenate([weighted, inp], axis=1)
    return jnp.tanh(h_cat @ w_out.T), attn


def _check(B, S, D, key, batch_tile=None, atol=1e-4, rtol=1e-4):
    k1, k2, k3, k4 = jax.random.split(key, 4)
    inp = jax.random.normal(k1, (B, D), dtype=jnp.float32)
    ctx = jax.random.normal(k2, (B, S, D), dtype=jnp.float32)
    w_in = jax.random.uniform(k3, (D, D), dtype=jnp.float32,
                              minval=-1.0 / jnp.sqrt(D), maxval=1.0 / jnp.sqrt(D))
    w_out = jax.random.uniform(k4, (D, 2 * D), dtype=jnp.float32,
                               minval=-1.0 / jnp.sqrt(2 * D), maxval=1.0 / jnp.sqrt(2 * D))

    h_tilde, attn = soft_dot_attention(inp, ctx, w_in, w_out, batch_tile=batch_tile)
    jax.block_until_ready((h_tilde, attn))

    h_ref, attn_ref = _reference(inp, ctx, w_in, w_out)
    assert jnp.allclose(attn, attn_ref, atol=atol, rtol=rtol), "attn mismatch"
    assert jnp.allclose(h_tilde, h_ref, atol=atol, rtol=rtol), "h_tilde mismatch"


if __name__ == "__main__":
    # Keep f32 matmuls at full precision in both the kernel and the reference so
    # the correctness check is tight (default TPU matmul precision rounds f32
    # operands to bf16, which previously caused the h_tilde mismatch at D=128).
    jax.config.update("jax_default_matmul_precision", "highest")

    key = jax.random.PRNGKey(0)
    k_small, k_big = jax.random.split(key, 2)

    # Small demo shapes consistent with the module (batch=2, sourceL=8, dim=32).
    _check(B=2, S=8, D=32, key=k_small)

    # Lane-aligned, multi-grid-step check (exercises pipelined batch tiling and
    # the "parallel" batch axis): B=16 with batch_tile=8 -> grid of 2 steps.
    _check(B=16, S=128, D=128, key=k_big, batch_tile=8)

    print("KERNEL_OK")
</pallas_src>

<mosaic_0001>
module attributes {stable_mosaic.version = 11 : i64} {
  func.func @soft_dot_attention_kernel(%arg0: i32, %arg1: memref<2x32xf32, #tpu.memory_space<vmem>>, %arg2: memref<2x8x32xf32, #tpu.memory_space<vmem>>, %arg3: memref<32x32xf32, #tpu.memory_space<vmem>>, %arg4: memref<32x32xf32, #tpu.memory_space<vmem>>, %arg5: memref<32x32xf32, #tpu.memory_space<vmem>>, %arg6: memref<2x32xf32, #tpu.memory_space<vmem>>, %arg7: memref<2x8xf32, #tpu.memory_space<vmem>>) attributes {dimension_semantics = [#tpu.dimension_semantics<parallel>], iteration_bounds = array<i64: 1>, scalar_prefetch = 0 : i64, scratch_operands = 0 : i64, tpu.core_type = #tpu.core_type<tc>, window_params = [{transform_indices = @transform_0, window_bounds = array<i64: 2, 32>}, {transform_indices = @transform_1, window_bounds = array<i64: 2, 8, 32>}, {pipeline_mode = #tpu.pipeline_mode<synchronous>, transform_indices = @transform_2, window_bounds = array<i64: 32, 32>}, {pipeline_mode = #tpu.pipeline_mode<synchronous>, transform_indices = @transform_3, window_bounds = array<i64: 32, 32>}, {pipeline_mode = #tpu.pipeline_mode<synchronous>, transform_indices = @transform_4, window_bounds = array<i64: 32, 32>}, {transform_indices = @transform_5, window_bounds = array<i64: 2, 32>}, {transform_indices = @transform_6, window_bounds = array<i64: 2, 8>}]} {
    %c0 = arith.constant 0 : index
    %c0_0 = arith.constant 0 : index
    %0 = vector.load %arg1[%c0, %c0_0] : memref<2x32xf32, #tpu.memory_space<vmem>>, vector<2x32xf32>
    %c0_1 = arith.constant 0 : index
    %c0_2 = arith.constant 0 : index
    %c0_3 = arith.constant 0 : index
    %1 = vector.load %arg2[%c0_1, %c0_2, %c0_3] : memref<2x8x32xf32, #tpu.memory_space<vmem>>, vector<2x8x32xf32>
    %c0_4 = arith.constant 0 : index
    %c0_5 = arith.constant 0 : index
    %2 = vector.load %arg3[%c0_4, %c0_5] : memref<32x32xf32, #tpu.memory_space<vmem>>, vector<32x32xf32>
    %cst = arith.constant dense<0.000000e+00> : vector<2x32xf32>
    %3 = tpu.matmul %0, %2, %cst {dimension_numbers = #tpu.dot_dimension_numbers<[1], [0], [0], [1], [0, 0, 1, 1], [], []>, precision = #tpu.contract_precision<fp32>} : vector<2x32xf32>, vector<32x32xf32>, vector<2x32xf32> -> vector<2x32xf32>
    %4 = vector.shape_cast %3 : vector<2x32xf32> to vector<2x1x32xf32>
    %5 = vector.broadcast %4 : vector<2x1x32xf32> to vector<2x8x32xf32>
    %6 = arith.mulf %1, %5 : vector<2x8x32xf32>
    %cst_6 = arith.constant dense<0.000000e+00> : vector<2x8xf32>
    %7 = vector.multi_reduction <add>, %6, %cst_6 [2] : vector<2x8x32xf32> to vector<2x8xf32>
    %cst_7 = arith.constant dense<0xFF800000> : vector<2xf32>
    %8 = vector.multi_reduction <maximumf>, %7, %cst_7 [1] : vector<2x8xf32> to vector<2xf32>
    %9 = vector.shape_cast %8 : vector<2xf32> to vector<2x1xf32>
    %10 = vector.broadcast %9 : vector<2x1xf32> to vector<2x8xf32>
    %11 = arith.subf %7, %10 : vector<2x8xf32>
    %12 = math.exp %11 : vector<2x8xf32>
    %cst_8 = arith.constant dense<0.000000e+00> : vector<2xf32>
    %13 = vector.multi_reduction <add>, %12, %cst_8 [1] : vector<2x8xf32> to vector<2xf32>
    %14 = vector.shape_cast %13 : vector<2xf32> to vector<2x1xf32>
    %15 = vector.broadcast %14 : vector<2x1xf32> to vector<2x8xf32>
    %16 = arith.divf %12, %15 : vector<2x8xf32>
    %17 = vector.shape_cast %16 : vector<2x8xf32> to vector<2x8x1xf32>
    %18 = vector.broadcast %17 : vector<2x8x1xf32> to vector<2x8x32xf32>
    %19 = arith.mulf %18, %1 : vector<2x8x32xf32>
    %cst_9 = arith.constant dense<0.000000e+00> : vector<2x32xf32>
    %20 = vector.multi_reduction <add>, %19, %cst_9 [1] : vector<2x8x32xf32> to vector<2x32xf32>
    %c0_10 = arith.constant 0 : index
    %c0_11 = arith.constant 0 : index
    %21 = vector.load %arg4[%c0_10, %c0_11] : memref<32x32xf32, #tpu.memory_space<vmem>>, vector<32x32xf32>
    %cst_12 = arith.constant dense<0.000000e+00> : vector<2x32xf32>
    %22 = tpu.matmul %20, %21, %cst_12 {dimension_numbers = #tpu.dot_dimension_numbers<[1], [0], [0], [1], [0, 0, 1, 1], [], []>, precision = #tpu.contract_precision<fp32>} : vector<2x32xf32>, vector<32x32xf32>, vector<2x32xf32> -> vector<2x32xf32>
    %c0_13 = arith.constant 0 : index
    %c0_14 = arith.constant 0 : index
    %23 = vector.load %arg5[%c0_13, %c0_14] : memref<32x32xf32, #tpu.memory_space<vmem>>, vector<32x32xf32>
    %cst_15 = arith.constant dense<0.000000e+00> : vector<2x32xf32>
    %24 = tpu.matmul %0, %23, %cst_15 {dimension_numbers = #tpu.dot_dimension_numbers<[1], [0], [0], [1], [0, 0, 1, 1], [], []>, precision = #tpu.contract_precision<fp32>} : vector<2x32xf32>, vector<32x32xf32>, vector<2x32xf32> -> vector<2x32xf32>
    %25 = arith.addf %22, %24 : vector<2x32xf32>
    %26 = math.tanh %25 : vector<2x32xf32>
    %c0_16 = arith.constant 0 : index
    %c0_17 = arith.constant 0 : index
    %27 = vector.load %arg6[%c0_16, %c0_17] : memref<2x32xf32, #tpu.memory_space<vmem>>, vector<2x32xf32>
    tpu.vector_store %arg6[%c0_16, %c0_17], %26 {strides = array<i32>} : memref<2x32xf32, #tpu.memory_space<vmem>>, vector<2x32xf32>,
    %c0_18 = arith.constant 0 : index
    %c0_19 = arith.constant 0 : index
    %28 = vector.load %arg7[%c0_18, %c0_19] : memref<2x8xf32, #tpu.memory_space<vmem>>, vector<2x8xf32>
    tpu.vector_store %arg7[%c0_18, %c0_19], %16 {strides = array<i32>} : memref<2x8xf32, #tpu.memory_space<vmem>>, vector<2x8xf32>,
    return
  }
  func.func @transform_0(%arg0: i32) -> (i32, i32) {
    %c0_i32 = arith.constant 0 : i32
    %c0_i32_0 = arith.constant 0 : i32
    return %arg0, %c0_i32 : i32, i32
  }
  func.func @transform_1(%arg0: i32) -> (i32, i32, i32) {
    %c0_i32 = arith.constant 0 : i32
    %c0_i32_0 = arith.constant 0 : i32
    %c0_i32_1 = arith.constant 0 : i32
    return %arg0, %c0_i32, %c0_i32_0 : i32, i32, i32
  }
  func.func @transform_2(%arg0: i32) -> (i32, i32) {
    %c0_i32 = arith.constant 0 : i32
    %c0_i32_0 = arith.constant 0 : i32
    %c0_i32_1 = arith.constant 0 : i32
    return %c0_i32, %c0_i32_0 : i32, i32
  }
  func.func @transform_3(%arg0: i32) -> (i32, i32) {
    %c0_i32 = arith.constant 0 : i32
    %c0_i32_0 = arith.constant 0 : i32
    %c0_i32_1 = arith.constant 0 : i32
    return %c0_i32, %c0_i32_0 : i32, i32
  }
  func.func @transform_4(%arg0: i32) -> (i32, i32) {
    %c0_i32 = arith.constant 0 : i32
    %c0_i32_0 = arith.constant 0 : i32
    %c0_i32_1 = arith.constant 0 : i32
    return %c0_i32, %c0_i32_0 : i32, i32
  }
  func.func @transform_5(%arg0: i32) -> (i32, i32) {
    %c0_i32 = arith.constant 0 : i32
    %c0_i32_0 = arith.constant 0 : i32
    return %arg0, %c0_i32 : i32, i32
  }
  func.func @transform_6(%arg0: i32) -> (i32, i32) {
    %c0_i32 = arith.constant 0 : i32
    %c0_i32_0 = arith.constant 0 : i32
    return %arg0, %c0_i32 : i32, i32
  }
}

</mosaic_0001>

<bundles_post_ra>
// kernel: tpu_custom_call.1
= control target key start
LH: loop header
LB: loop body
LE: loop exit
PB: predicated region body
PF: predicated region fallthrough
CT: control target
= control target key end

     0   :  { %12 = vsyncpa [#allocation3], 0  ;;  %s2587_s0 = inlined_call_operand.hbm [shape: f32[2,32], index: 0, kind: input, shape index: {}]   ;;  %s2588_s1 = inlined_call_operand.hbm [shape: f32[2,8,32], index: 1, kind: input, shape index: {}]   ;;  %s2589_s2 = inlined_call_operand.hbm [shape: f32[32,32], index: 2, kind: input, shape index: {}]   ;;  %s2590_s3 = inlined_call_operand.hbm [shape: f32[32,32], index: 3, kind: input, shape index: {}]   ;;  %s2591_s4 = inlined_call_operand.hbm [shape: f32[32,32], index: 4, kind: input, shape index: {}]   ;;  %s2592_s5 = inlined_call_operand.hbm [shape: f32[2,32], index: 5, kind: output, shape index: {0}]   ;;  %s2593_s6 = inlined_call_operand.hbm [shape: f32[2,8], index: 6, kind: output, shape index: {1}]  }
   0x1   :  { %13 = vsyncpa [#allocation6], 0 }
   0x2   :  { %14 = vsyncpa [#allocation9], 0 }
   0x3   :  { %15 = vsyncpa [#allocation4], 0 }
   0x4   :  { %16 = vsyncpa [#allocation13], 0  ;;  %s2216_s21 = smov [#allocation5]  }
   0x5   :  { %s32_s22 = sshll.u32 %s2216_s21, 4  ;;  %s33_s22 = int_to_ptr.vmem [resolvable:$true] %s32_s22 }
   0x6   :  { %s2074_s23 = scalar_lea.vmem %s33_s22, 256  ;;  %p2079_p1 = scmp.lt.s32.totalorder %s33_s22, %s33_s22 }
   0x7   :  { %p2075_p0 = scmp.ne.s32.totalorder %s33_s22, %s2074_s23  ;;  %p2080_p2 = scmp.lt.s32.totalorder %s2074_s23, %s2074_s23 }
   0x9   :  { %p2081_p3 = por %p2080_p2, %p2079_p1 }
   0xb   :  { %p2082_p4 = pnand %p2081_p3, %p2075_p0 }
   0xd   :  { %2085 = shalt.err (!%p2082_p4)
}
   0xe   :  { %s2217_s24 = smov 128   ;;  %s2218_s25 = smov 8  }
   0xf   :  { %38 = dma.hbm_to_vmem [thread:$0]  %s2588_s1, 256, %s33_s22, [#allocation6], %s2217_s24, %s2217_s24, %s2218_s25  }
  0x10   :  { %s2219_s28 = smov [#allocation8]   ;;  %s2220_s30 = smov [#allocation2]  }
  0x11   :  { %s56_s29 = sshll.u32 %s2219_s28, 4  ;;  %s23_s7 = sshll.u32 %s2220_s30, 4  ;;  %s57_s29 = int_to_ptr.vmem [resolvable:$true] %s56_s29  ;;  %s24_s7 = int_to_ptr.vmem [resolvable:$true] %s23_s7 }
  0x12   :  { %s2094_s8 = scalar_lea.vmem %s57_s29, 512  ;;  %p2099_p6 = scmp.lt.s32.totalorder %s57_s29, %s57_s29 }
  0x13   :  { %p2095_p5 = scmp.ne.s32.totalorder %s57_s29, %s2094_s8  ;;  %p2100_p7 = scmp.lt.s32.totalorder %s2094_s8, %s2094_s8 }
  0x15   :  { %p2101_p8 = por %p2100_p7, %p2099_p6 }
  0x17   :  { %p2102_p9 = pnand %p2101_p8, %p2095_p5 }
  0x19   :  { %2105 = shalt.err (!%p2102_p9)
}
  0x1a   :  { %62 = dma.hbm_to_vmem [thread:$0]  %s2590_s3, 512, %s57_s29, [#allocation9], %s2217_s24, %s2217_s24, %s2218_s25  }
  0x1b   :  { %s2114_s1 = scalar_lea.vmem %s24_s7, 32  ;;  %p2119_p11 = scmp.lt.s32.totalorder %s24_s7, %s24_s7 }
  0x1c   :  { %p2115_p10 = scmp.ne.s32.totalorder %s24_s7, %s2114_s1  ;;  %p2120_p12 = scmp.lt.s32.totalorder %s2114_s1, %s2114_s1 }
  0x1e   :  { %p2121_p13 = por %p2120_p12, %p2119_p11 }
  0x20   :  { %p2122_p0 = pnand %p2121_p13, %p2115_p10 }
  0x22   :  { %2125 = shalt.err (!%p2122_p0)
}
  0x23   :  { %26 = dma.hbm_to_vmem [thread:$0]  %s2587_s0, 32, %s24_s7, [#allocation3]  }
  0x24   :  { %s2221_s13 = smov [#allocation7]   ;;  %s2222_s15 = smov [#allocation10]  }
  0x25   :  { %s44_s14 = sshll.u32 %s2221_s13, 4  ;;  %s68_s16 = sshll.u32 %s2222_s15, 4  ;;  %s45_s14 = int_to_ptr.vmem [resolvable:$true] %s44_s14  ;;  %s69_s16 = int_to_ptr.vmem [resolvable:$true] %s68_s16 }
  0x26   :  { %s2134_s17 = scalar_lea.vmem %s45_s14, 512  ;;  %p2139_p2 = scmp.lt.s32.totalorder %s45_s14, %s45_s14 }
  0x27   :  { %p2135_p1 = scmp.ne.s32.totalorder %s45_s14, %s2134_s17  ;;  %p2140_p3 = scmp.lt.s32.totalorder %s2134_s17, %s2134_s17 }
  0x29   :  { %p2141_p4 = por %p2140_p3, %p2139_p2 }
  0x2b   :  { %p2142_p5 = pnand %p2141_p4, %p2135_p1 }
  0x2d   :  { %2145 = shalt.err (!%p2142_p5)
}
  0x2e   :  { %50 = dma.hbm_to_vmem [thread:$0]  %s2589_s2, 512, %s45_s14, [#allocation6], %s2217_s24, %s2217_s24, %s2218_s25  }
  0x2f   :  { %s2154_s0 = scalar_lea.vmem %s69_s16, 512  ;;  %p2159_p7 = scmp.lt.s32.totalorder %s69_s16, %s69_s16 }
  0x30   :  { %p2155_p6 = scmp.ne.s32.totalorder %s69_s16, %s2154_s0  ;;  %p2160_p8 = scmp.lt.s32.totalorder %s2154_s0, %s2154_s0 }
  0x32   :  { %p2161_p9 = por %p2160_p8, %p2159_p7 }
  0x34   :  { %p2162_p10 = pnand %p2161_p9, %p2155_p6 }
  0x36   :  { %2165 = shalt.err (!%p2162_p10)
}
  0x37   :  { %74 = dma.hbm_to_vmem [thread:$0]  %s2591_s4, 512, %s69_s16, [#allocation9], %s2217_s24, %s2217_s24, %s2218_s25  }
  0x38   :  { %2206 = dma.done.wait [#allocation3], 32  }
  0x39   :  { %2207 = vsyncadd [#allocation3], 4294967264 }
  0x3a   :  { %2208 = dma.done.wait [#allocation6], 768  }
  0x3b   :  { %2209 = vsyncadd [#allocation6], 4294966528 }
  0x3c   :  { %2210 = dma.done.wait [#allocation9], 1024  }
  0x3d   :  { %2211 = vsyncadd [#allocation9], 4294966272  ;;  %v2223_v0 = vmov 0.0   ;;  %vm2224_vm0 = vmmov 0   ;;  %vm97_vm1 = vcmask 261120   ;;  %v96_v1 = vld [vmem:[#allocation7 + $0x18] sm:$0xff]  ;;  %v590_v42 = vlaneseq }
  0x3e   :  { %1843 = vmatprep.subr.mxu0 %v2223_v0  ;;  %1854 = vmatprep.subr.mxu1 %v2223_v0  ;;  %v95_v2 = vld [vmem:[#allocation7 + $0x10] sm:$0xff]  ;;  %v94_v3 = vld [vmem:[#allocation7 + $0x8] sm:$0xff]  ;;  %v2297_v4 = vand.u32 4294901760, %v96_v1  ;;  %v93_v7 = vld [vmem:[#allocation7] sm:$0xff]  ;;  %v2225_v40 = vmov 1966171168  }
  0x3f   :  { %1851 = vmatprep.mubr.msk.f32.mxu0 %vm2224_vm0, %v2223_v0  ;;  %1862 = vmatprep.mubr.msk.f32.mxu1 %vm2224_vm0, %v2223_v0  ;;  %v2299_v5 = vand.u32 4294901760, %v95_v2  ;;  %v2301_v6 = vand.u32 4294901760, %v94_v3  ;;  %v90_v8 = vld [vmem:[#allocation2] sm:$0x3]  ;;  %v2303_v9 = vand.u32 4294901760, %v93_v7  ;;  %v588_v41 = vunpack.c.l.s4 %v2225_v40  ;;  %v2382_v59 = vld [vmem:[#allocation5] sm:$0xff] }
  0x40   :  { %v99_v10 = vsel %vm97_vm1, %v90_v8, 0  ;;  %1844 = vmatpush3.msra.mxu0 %v2297_v4  ;;  %v206_v11 = vsub.f32 %v96_v1, %v2297_v4  ;;  %v2376_v49 = vshrl.u32 %v590_v42, 7  ;;  %v2385_v62 = vld [vmem:[#allocation5 + $0x8] sm:$0xff]  ;;  %vm639_vm2 = vcmask 1041409   ;;  %v729_v40 = vld [vmem:[#allocation10] sm:$0xff]  ;;  %s2227_s2 = smov [#allocation12]  }
  0x41   :  { %v2308_v12 = vand.u32 4294901760, %v99_v10  ;;  %v213_v13 = vsub.f32 %v95_v2, %v2299_v5  ;;  %v220_v14 = vsub.f32 %v94_v3, %v2301_v6  ;;  %1845 = vmatprep.subr.mxu0 %v2223_v0  ;;  %v227_v15 = vsub.f32 %v93_v7, %v2303_v9  ;;  %s1738_s4 = sshll.u32 %s2227_s2, 4  ;;  %s1739_s4 = int_to_ptr.vmem [resolvable:$true] %s1738_s4 }
  0x42   :  { %1846 = vmatpush3.msra.mxu0 %v2299_v5  ;;  %v207_v16 = vand.u32 4294901760, %v206_v11  ;;  %v589_v48 = vunpack.c.0.s8 %v588_v41  ;;  %v2380_v56 = vsub.s32 0, %v2376_v49  ;;  %vm642_vm3 = vcmask 58368   ;;  %s2166_s21 = scalar_lea.vmem %s1739_s4, 32  ;;  %p2171_p12 = scmp.lt.s32.totalorder %s1739_s4, %s1739_s4 }
  0x43   :  { %v2316_v17 = vsub.f32 %v99_v10, %v2308_v12  ;;  %v214_v18 = vand.u32 4294901760, %v213_v13  ;;  %v221_v19 = vand.u32 4294901760, %v220_v14  ;;  %1847 = vmatprep.subr.mxu0 %v2223_v0  ;;  %v228_v20 = vand.u32 4294901760, %v227_v15  ;;  %p2167_p11 = scmp.ne.s32.totalorder %s1739_s4, %s2166_s21  ;;  %p2172_p13 = scmp.lt.s32.totalorder %s2166_s21, %s2166_s21 }
  0x44   :  { %1848 = vmatpush3.msra.mxu0 %v2301_v6  ;;  %v208_v21 = vsub.f32 %v206_v11, %v207_v16  ;;  %v592_v51 = vsub.s32 %v589_v48, %v2376_v49  ;;  %v2417_v41 = vand.u32 4294901760, %v729_v40 }
  0x45   :  { %v2321_v22 = vand.u32 4294901760, %v2316_v17  ;;  %v215_v23 = vsub.f32 %v213_v13, %v214_v18  ;;  %v222_v24 = vsub.f32 %v220_v14, %v221_v19  ;;  %1849 = vmatprep.subr.mxu0 %v2223_v0  ;;  %v229_v28 = vsub.f32 %v227_v15, %v228_v20  ;;  %p2173_p0 = por %p2172_p13, %p2171_p12 }
  0x46   :  { %1850 = vmatpush3.msra.mxu0 %v2303_v9  ;;  %v209_v25 = vand.u32 4294901760, %v208_v21 }
  0x47   :  { %v173_v26 = vsub.f32 %v2316_v17, %v2321_v22  ;;  %v216_v27 = vand.u32 4294901760, %v215_v23  ;;  %1865 = vmatprep.subr.mxu0 %v2223_v0  ;;  %v223_v30 = vand.u32 4294901760, %v222_v24  ;;  %v230_v31 = vand.u32 4294901760, %v229_v28  ;;  %p2174_p1 = pnand %p2173_p0, %p2167_p11 }
  0x48   :  { %1855 = vmatpush3.msra.mxu1 %v209_v25 }
  0x49   :  { %v2328_v29 = vand.u32 4294901760, %v173_v26  ;;  %1856 = vmatprep.subr.mxu1 %v2223_v0 }
  0x4a   :  { %1857 = vmatpush3.msra.mxu1 %v216_v27 }
  0x4b   :  { %1852 = vmatmul.mubr.f32.vlgmr.msra.gmra.mxu0 %v2328_v29  ;;  %1858 = vmatprep.subr.mxu1 %v2223_v0 }
  0x4c   :  { %1866 = vmatpush3.msra.mxu0 %v206_v11  ;;  %1859 = vmatpush3.msra.mxu1 %v223_v30 }
  0x4d   :  { %1867 = vmatprep.subr.mxu0 %v2223_v0  ;;  %1860 = vmatprep.subr.mxu1 %v2223_v0 }
  0x4e   :  { %1868 = vmatpush3.msra.mxu0 %v213_v13  ;;  %1861 = vmatpush3.msra.mxu1 %v230_v31 }
  0x4f   :  { %1869 = vmatprep.subr.mxu0 %v2223_v0  ;;  %1863 = vmatmul.mubr.f32.vlgmr.msra.gmra.mxu1 %v2308_v12 }
  0x50   :  { %1870 = vmatpush3.msra.mxu0 %v220_v14  ;;  %1876 = vmatprep.subr.mxu1 %v2223_v0  ;;  %v2226_v14 = vmov 0  }
  0x51   :  { %1871 = vmatprep.subr.mxu0 %v2223_v0  ;;  %1873 = vmatprep.mubr.msk.f32.mxu0 %vm2224_vm0, %v2223_v0 }
  0x52   :  { %1872 = vmatpush3.msra.mxu0 %v227_v15  ;;  %1877 = vmatpush3.msra.mxu1 %v2297_v4  ;;  %v653_v15 = vsub.s32 1, %v2376_v49 }
  0x53   :  { %1874 = vmatmul.mubr.f32.vlgmr.msra.gmra.mxu0 %v2316_v17  ;;  %1878 = vmatprep.subr.mxu1 %v2223_v0 }
  0x54   :  { %1887 = vmatprep.subr.mxu0 %v2223_v0  ;;  %1879 = vmatpush3.msra.mxu1 %v2299_v5 }
  0x55   :  { %1888 = vmatpush3.msra.mxu0 %v207_v16  ;;  %1880 = vmatprep.subr.mxu1 %v2223_v0 }
  0x56   :  { %1889 = vmatprep.subr.mxu0 %v2223_v0  ;;  %1881 = vmatpush3.msra.mxu1 %v2301_v6 }
  0x57   :  { %1890 = vmatpush3.msra.mxu0 %v214_v18  ;;  %1882 = vmatprep.subr.mxu1 %v2223_v0 }
  0x58   :  { %1891 = vmatprep.subr.mxu0 %v2223_v0  ;;  %1883 = vmatpush3.msra.mxu1 %v2303_v9 }
  0x59   :  { %1884 = vmatprep.mubr.msk.f32.mxu1 %vm2224_vm0, %v2223_v0  ;;  %1892 = vmatpush3.msra.mxu0 %v221_v19 }
  0x5a   :  { %1885 = vmatmul.mubr.f32.vlgmr.msra.gmra.mxu1 %v2321_v22  ;;  %1893 = vmatprep.subr.mxu0 %v2223_v0 }
  0x5b   :  { %1898 = vmatprep.subr.mxu1 %v2223_v0  ;;  %1894 = vmatpush3.msra.mxu0 %v228_v20 }
  0x5c   :  { %1895 = vmatprep.mubr.msk.f32.mxu0 %vm2224_vm0, %v2223_v0  ;;  %1899 = vmatpush3.msra.mxu1 %v2297_v4 }
  0x5d   :  { %1896 = vmatmul.mubr.f32.vlgmr.msra.gmra.mxu0 %v2308_v12  ;;  %1900 = vmatprep.subr.mxu1 %v2223_v0 }
  0x5e   :  { %1906 = vmatprep.mubr.msk.f32.mxu1 %vm2224_vm0, %v2223_v0  ;;  %1901 = vmatpush3.msra.mxu1 %v2299_v5  ;;  %v630_v5 = vand.u32 127, %v590_v42 }
  0x5f   :  { %1909 = vmatprep.subr.mxu0 %v2223_v0  ;;  %1902 = vmatprep.subr.mxu1 %v2223_v0 }
  0x60   :  { %1917 = vmatprep.mubr.msk.f32.mxu0 %vm2224_vm0, %v2223_v0  ;;  %1903 = vmatpush3.msra.mxu1 %v2301_v6  ;;  %v2393_v7 = vsub.s32 %v630_v5, %v2376_v49  ;;  %v726_v49 = vld [vmem:[#allocation8 + $0x8] sm:$0xff] }
  0x61   :  { %1904 = vmatprep.subr.mxu1 %v2223_v0  ;;  %2055 = vset.pattern.permute.xlu0 %v2226_v14 }
  0x62   :  { %1905 = vmatpush3.msra.mxu1 %v2303_v9  ;;  %2054 = vset.pattern.permute.xlu1 %v2226_v14 }
  0x63   :  { %1907 = vmatmul.mubr.f32.vlgmr.msra.gmra.mxu1 %v2308_v12  ;;  %1920 = vmatprep.subr.mxu1 %v2223_v0 }
  0x64   :  { %1928 = vmatprep.mubr.msk.f32.mxu1 %vm2224_vm0, %v2223_v0 }
 0x10b   :  { %v176_v32 = vpop.f32.mrf.mxu0 }
 0x10d   :  { %v1853_v33 = vpop.f32.mrf.mxu0 }
 0x10f   :  { %v267_v34 = vpop.f32.mrf.mxu1 }
 0x110   :  { %v268_v38 = vadd.f32 %v267_v34, %v176_v32  ;;  %v732_v34 = vld [vmem:[#allocation10 + $0x18] sm:$0xff] }
 0x111   :  { %v1864_v35 = vpop.f32.mrf.mxu1 }
 0x112   :  { %v731_v35 = vld [vmem:[#allocation10 + $0x10] sm:$0xff] }
 0x113   :  { %v347_v36 = vpop.f32.mrf.mxu0 }
 0x114   :  { %v348_v44 = vadd.f32 %v347_v36, %v268_v38  ;;  %v730_v36 = vld [vmem:[#allocation10 + $0x8] sm:$0xff]  ;;  %v2413_v38 = vand.u32 4294901760, %v731_v35 }
 0x115   :  { %v1875_v37 = vpop.f32.mrf.mxu0 }
 0x116   :  { %v758_v37 = vand.u32 4294901760, %v732_v34 }
 0x118   :  { %1910 = vmatpush3.msra.mxu0 %v758_v37  ;;  %v838_v42 = vsub.f32 %v732_v34, %v758_v37 }
 0x119   :  { %1911 = vmatprep.subr.mxu0 %v2223_v0 }
 0x11a   :  { %v424_v39 = vpop.f32.mrf.mxu1  ;;  %1912 = vmatpush3.msra.mxu0 %v2413_v38 }
 0x11b   :  { %v425_v46 = vadd.f32 %v424_v39, %v348_v44  ;;  %v2415_v39 = vand.u32 4294901760, %v730_v36  ;;  %1913 = vmatprep.subr.mxu0 %v2223_v0 }
 0x11c   :  { %v1886_v43 = vpop.f32.mrf.mxu1 }
 0x11d   :  { %v507_v45 = vpop.f32.mrf.mxu0  ;;  %v845_v43 = vsub.f32 %v731_v35, %v2413_v38  ;;  %v852_v44 = vsub.f32 %v730_v36, %v2415_v39  ;;  %1914 = vmatpush3.msra.mxu0 %v2415_v39 }
 0x11e   :  { %v508_v50 = vadd.f32 %v507_v45, %v425_v46  ;;  %v859_v45 = vsub.f32 %v729_v40, %v2417_v41  ;;  %v839_v46 = vand.u32 4294901760, %v838_v42  ;;  %1915 = vmatprep.subr.mxu0 %v2223_v0 }
 0x11f   :  { %v1897_v47 = vpop.f32.mrf.mxu0  ;;  %v853_v48 = vand.u32 4294901760, %v852_v44  ;;  %1916 = vmatpush3.msra.mxu0 %v2417_v41 }
 0x120   :  { %v846_v47 = vand.u32 4294901760, %v845_v43  ;;  %1931 = vmatprep.subr.mxu0 %v2223_v0  ;;  %1918 = vmatmul.mubr.f32.vlgmr.msra.gmra.mxu0 %v2328_v29 }
 0x121   :  { %1932 = vmatpush3.msra.mxu0 %v838_v42  ;;  %1939 = vmatprep.mubr.msk.f32.mxu0 %vm2224_vm0, %v2223_v0 }
 0x122   :  { %1933 = vmatprep.subr.mxu0 %v2223_v0 }
 0x123   :  { %v582_v52 = vpop.f32.mrf.mxu1  ;;  %1934 = vmatpush3.msra.mxu0 %v845_v43 }
 0x124   :  { %v583_v53 = vadd.f32 %v582_v52, %v508_v50  ;;  %v860_v50 = vand.u32 4294901760, %v859_v45  ;;  %v847_v52 = vsub.f32 %v845_v43, %v846_v47  ;;  %1935 = vmatprep.subr.mxu0 %v2223_v0 }
 0x125   :  { %v1908_v54 = vpop.f32.mrf.mxu1  ;;  %1936 = vmatpush3.msra.mxu0 %v852_v44 }
 0x126   :  { %v593_v55 = vrot.slane %v583_v53, %v592_v51  ;;  %v854_v53 = vsub.f32 %v852_v44, %v853_v48  ;;  %1937 = vmatprep.subr.mxu0 %v2223_v0 }
 0x127   :  { %1938 = vmatpush3.msra.mxu0 %v859_v45 }
 0x128   :  { %v594_v57 = vcombine.high %v593_v55, %v593_v55  ;;  %v601_v58 = vrot.slane %v593_v55, %v592_v51  ;;  %v848_v55 = vand.u32 4294901760, %v847_v52  ;;  %1953 = vmatprep.subr.mxu0 %v2223_v0  ;;  %1940 = vmatmul.mubr.f32.vlgmr.msra.gmra.mxu0 %v2316_v17 }
 0x129   :  { %1954 = vmatpush3.msra.mxu0 %v839_v46  ;;  %1961 = vmatprep.mubr.msk.f32.mxu0 %vm2224_vm0, %v2223_v0 }
 0x12a   :  { %v612_v60 = vrot.slane %v601_v58, %v2380_v56  ;;  %v608_v61 = vrot.slane %v594_v57, %v592_v51  ;;  %v840_v51 = vsub.f32 %v838_v42, %v839_v46  ;;  %v861_v57 = vsub.f32 %v859_v45, %v860_v50  ;;  %1955 = vmatprep.subr.mxu0 %v2223_v0 }
 0x12b   :  { %v855_v58 = vand.u32 4294901760, %v854_v53  ;;  %1956 = vmatpush3.msra.mxu0 %v846_v47 }
 0x12c   :  { %v619_v63 = vmul.f32 %v612_v60, %v2382_v59  ;;  %v616_v1 = vrot.slane %v608_v61, %v2380_v56  ;;  %v841_v54 = vand.u32 4294901760, %v840_v51  ;;  %v862_v60 = vand.u32 4294901760, %v861_v57  ;;  %1957 = vmatprep.subr.mxu0 %v2223_v0 }
 0x12d   :  { %1958 = vmatpush3.msra.mxu0 %v853_v48 }
 0x12e   :  { %v621_v2 = vsel %vm97_vm1, %v619_v63, 0.0  ;;  %v620_v3 = vmul.f32 %v616_v1, %v2385_v62  ;;  %1921 = vmatpush3.msra.mxu1 %v841_v54  ;;  %1959 = vmatprep.subr.mxu0 %v2223_v0  ;;  %v728_v1 = vld [vmem:[#allocation8 + $0x18] sm:$0xff] }
 0x12f   :  { %622 = vadd.xlane.f32.xlu0 %v621_v2  ;;  %1922 = vmatprep.subr.mxu1 %v2223_v0 }
 0x130   :  { %v624_v4 = vsel %vm97_vm1, %v620_v3, 0.0  ;;  %1923 = vmatpush3.msra.mxu1 %v848_v55  ;;  %1960 = vmatpush3.msra.mxu0 %v860_v50  ;;  %v2478_v3 = vand.u32 4294901760, %v728_v1 }
 0x131   :  { %1924 = vmatprep.subr.mxu1 %v2223_v0  ;;  %1962 = vmatmul.mubr.f32.vlgmr.msra.gmra.mxu0 %v2308_v12 }
 0x132   :  { %1925 = vmatpush3.msra.mxu1 %v855_v58  ;;  %1975 = vmatprep.subr.mxu0 %v2223_v0  ;;  %v2481_v5 = vsub.f32 %v728_v1, %v2478_v3 }
 0x133   :  { %625 = vadd.xlane.f32.xlu0 %v624_v4  ;;  %1926 = vmatprep.subr.mxu1 %v2223_v0  ;;  %v727_v4 = vld [vmem:[#allocation8 + $0x10] sm:$0xff] }
 0x134   :  { %1927 = vmatpush3.msra.mxu1 %v862_v60  ;;  %1983 = vmatprep.mubr.msk.f32.mxu0 %vm2224_vm0, %v2223_v0 }
 0x135   :  { %1942 = vmatprep.subr.mxu1 %v2223_v0  ;;  %1929 = vmatmul.mubr.f32.vlgmr.msra.gmra.mxu1 %v2308_v12 }
 0x136   :  { %1943 = vmatpush3.msra.mxu1 %v758_v37  ;;  %1950 = vmatprep.mubr.msk.f32.mxu1 %vm2224_vm0, %v2223_v0 }
 0x137   :  { %1944 = vmatprep.subr.mxu1 %v2223_v0  ;;  %1976 = vmatpush3.msra.mxu0 %v2478_v3 }
 0x138   :  { %1945 = vmatpush3.msra.mxu1 %v2413_v38  ;;  %1977 = vmatprep.subr.mxu0 %v2223_v0 }
 0x139   :  { %1946 = vmatprep.subr.mxu1 %v2223_v0 }
 0x13a   :  { %1947 = vmatpush3.msra.mxu1 %v2415_v39 }
 0x13b   :  { %1948 = vmatprep.subr.mxu1 %v2223_v0 }
 0x13c   :  { %1949 = vmatpush3.msra.mxu1 %v2417_v41 }
 0x13d   :  { %1964 = vmatprep.subr.mxu1 %v2223_v0  ;;  %1951 = vmatmul.mubr.f32.vlgmr.msra.gmra.mxu1 %v2321_v22 }
 0x13e   :  { %1965 = vmatpush3.msra.mxu1 %v758_v37  ;;  %1972 = vmatprep.mubr.msk.f32.mxu1 %vm2224_vm0, %v2223_v0 }
 0x13f   :  { %1966 = vmatprep.subr.mxu1 %v2223_v0 }
 0x140   :  { %1967 = vmatpush3.msra.mxu1 %v2413_v38 }
 0x141   :  { %1968 = vmatprep.subr.mxu1 %v2223_v0 }
 0x142   :  { %1969 = vmatpush3.msra.mxu1 %v2415_v39 }
 0x143   :  { %1970 = vmatprep.subr.mxu1 %v2223_v0 }
 0x144   :  { %1971 = vmatpush3.msra.mxu1 %v2417_v41 }
 0x145   :  { %1986 = vmatprep.subr.mxu1 %v2223_v0  ;;  %1973 = vmatmul.mubr.f32.vlgmr.msra.gmra.mxu1 %v2308_v12 }
 0x146   :  { %1994 = vmatprep.mubr.msk.f32.mxu1 %vm2224_vm0, %v2223_v0 }
 0x1b8   :  { %v623_v6 = vpop.xlane.xlu0 %622 }
 0x1b9   :  { %v634_v9 = vrot.slane %v623_v6, %v2393_v7 }
 0x1bc   :  { %v626_v8 = vpop.xlane.xlu0 %625 }
 0x1bd   :  { %v638_v10 = vrot.slane %v626_v8, %v2393_v7 }
 0x1bf   :  { %v640_v11 = vsel %vm639_vm2, %v638_v10, %v634_v9  ;;  %v2491_v9 = vand.u32 4294901760, %v726_v49  ;;  %v725_v10 = vld [vmem:[#allocation8] sm:$0xff] }
 0x1c0   :  { %v643_v13 = vsel %vm642_vm3, %v640_v11, -inf }
 0x1c1   :  { %644 = vmax.xlane.f32.xlu1 %v643_v13  ;;  %v2500_v14 = vsub.f32 %v726_v49, %v2491_v9 }
 0x24a   :  { %v645_v16 = vpop.xlane.xlu1 %644 }
 0x24b   :  { %v650_v18 = vrot.slane %v645_v16, %v2380_v56  ;;  %v654_v19 = vrot.slane %v645_v16, %v653_v15 }
 0x24d   :  { %v657_v20 = vsub.f32 %v623_v6, %v650_v18  ;;  %v658_v21 = vsub.f32 %v626_v8, %v654_v19  ;;  %v1329_v6 = vand.u32 4294901760, %v2481_v5  ;;  %v1343_v19 = vand.u32 4294901760, %v2500_v14 }
 0x24f   :  { %v659_v23 = vmul.f32 1.442695, %v657_v20  ;;  %v661_v24 = vmul.f32 1.442695, %v658_v21  ;;  %v1330_v11 = vsub.f32 %v2481_v5, %v1329_v6 }
 0x251   :  { %2056 = vpow2.f32 %v659_v23  ;;  %v1331_v16 = vand.u32 4294901760, %v1330_v11  ;;  %v1344_v23 = vsub.f32 %v2500_v14, %v1343_v19 }
 0x252   :  { %2058 = vpow2.f32 %v661_v24 }
 0x253   :  { %1987 = vmatpush3.msra.mxu1 %v1331_v16 }
 0x254   :  { %1988 = vmatprep.subr.mxu1 %v2223_v0 }
 0x25e   :  { %v2403_v25 = vpop.eup %2056 }
 0x25f   :  { %v2405_v26 = vpop.eup %2058  ;;  %666 = vperm.xlu1 %2054, %v2403_v25  }
 0x260   :  { %669 = vperm.xlu0 %2055, %v2405_v26  }
 0x2da   :  { %v667_v27 = vpop.permute.xlu1 %666 }
 0x2db   :  { %v670_v28 = vpop.permute.xlu0 %669  ;;  %v674_v30 = vrot.slane %v667_v27, %v2393_v7 }
 0x2dc   :  { %v678_v31 = vrot.slane %v670_v28, %v2393_v7  ;;  %v808_v28 = vpop.f32.mrf.mxu0 }
 0x2de   :  { %v679_v32 = vsel %vm639_vm2, %v678_v31, %v674_v30  ;;  %v1919_v30 = vpop.f32.mrf.mxu0  ;;  %v899_v31 = vpop.f32.mrf.mxu1 }
 0x2df   :  { %v681_v33 = vsel %vm642_vm3, %v679_v32, 0.0  ;;  %v900_v32 = vadd.f32 %v899_v31, %v808_v28 }
 0x2e0   :  { %682 = vadd.xlane.f32.xlu1 %v681_v33  ;;  %v1930_v33 = vpop.f32.mrf.mxu1  ;;  %v979_v34 = vpop.f32.mrf.mxu0 }
 0x2e1   :  { %v980_v35 = vadd.f32 %v979_v34, %v900_v32 }
 0x2e2   :  { %v1941_v36 = vpop.f32.mrf.mxu0  ;;  %v1056_v37 = vpop.f32.mrf.mxu1 }
 0x2e3   :  { %v1057_v38 = vadd.f32 %v1056_v37, %v980_v35 }
 0x2e4   :  { %v1952_v39 = vpop.f32.mrf.mxu1  ;;  %v1139_v40 = vpop.f32.mrf.mxu0 }
 0x2e5   :  { %v1140_v41 = vadd.f32 %v1139_v40, %v1057_v38 }
 0x2e6   :  { %v1214_v42 = vpop.f32.mrf.mxu1  ;;  %v1963_v43 = vpop.f32.mrf.mxu0 }
 0x2e7   :  { %v2526_v44 = vadd.f32 %v1214_v42, %v1140_v41 }
 0x2e8   :  { %v1974_v45 = vpop.f32.mrf.mxu1 }
 0x369   :  { %v683_v17 = vpop.xlane.xlu1 %682 }
 0x36a   :  { %v688_v22 = vrot.slane %v683_v17, %v2380_v56  ;;  %v692_v29 = vrot.slane %v683_v17, %v653_v15  ;;  %v2483_v56 = vand.u32 4294901760, %v727_v4  ;;  %v2502_v15 = vand.u32 4294901760, %v725_v10 }
 0x36c   :  { %2060 = vrcp.f32 %v688_v22  ;;  %v2489_v8 = vsub.f32 %v727_v4, %v2483_v56  ;;  %1978 = vmatpush3.msra.mxu0 %v2483_v56  ;;  %v2511_v20 = vsub.f32 %v725_v10, %v2502_v15 }
 0x36d   :  { %2062 = vrcp.f32 %v692_v29  ;;  %1979 = vmatprep.subr.mxu0 %v2223_v0 }
 0x36e   :  { %v1336_v13 = vand.u32 4294901760, %v2489_v8  ;;  %1980 = vmatpush3.msra.mxu0 %v2491_v9  ;;  %v1350_v24 = vand.u32 4294901760, %v2511_v20 }
 0x36f   :  { %1981 = vmatprep.subr.mxu0 %v2223_v0 }
 0x370   :  { %v1337_v18 = vsub.f32 %v2489_v8, %v1336_v13  ;;  %1982 = vmatpush3.msra.mxu0 %v2502_v15 }
 0x371   :  { %1997 = vmatprep.subr.mxu0 %v2223_v0 }
 0x372   :  { %v1338_v21 = vand.u32 4294901760, %v1337_v18 }
 0x374   :  { %1989 = vmatpush3.msra.mxu1 %v1338_v21 }
 0x375   :  { %1990 = vmatprep.subr.mxu1 %v2223_v0 }
 0x379   :  { %v2061_v61 = vpop.eup %2060 }
 0x37a   :  { %v696_v63 = vmul.f32 %v2061_v61, %v2403_v25  ;;  %v2063_v12 = vpop.eup %2062  ;;  %v1345_v25 = vand.u32 4294901760, %v1344_v23 }
 0x37b   :  { %v698_v2 = vmul.f32 %v2063_v12, %v2405_v26  ;;  %v1351_v26 = vsub.f32 %v2511_v20, %v1350_v24 }
 0x37c   :  { %701 = vperm.xlu0 %2055, %v696_v63   ;;  %1991 = vmatpush3.msra.mxu1 %v1345_v25 }
 0x37d   :  { %v1352_v27 = vand.u32 4294901760, %v1351_v26  ;;  %1992 = vmatprep.subr.mxu1 %v2223_v0 }
 0x37f   :  { %1993 = vmatpush3.msra.mxu1 %v1352_v27 }
 0x380   :  { %706 = vperm.xlu0 %2055, %v698_v2   ;;  %2008 = vmatprep.subr.mxu1 %v2223_v0 }
 0x3f7   :  { %v702_v46 = vpop.permute.xlu0 %701 }
 0x3f8   :  { %v709_v47 = vmul.f32 %v702_v46, %v2382_v59  ;;  %v1714_v52 = vrot.slane %v702_v46, %v2393_v7 }
 0x3fa   :  { %v711_v48 = vsel %vm97_vm1, %v709_v47, 0.0 }
 0x3fb   :  { %v712_v50 = vrot.slane %v711_v48, 4  ;;  %v707_v51 = vpop.permute.xlu0 %706 }
 0x3fc   :  { %v710_v53 = vmul.f32 %v707_v51, %v2385_v62  ;;  %v1718_v54 = vrot.slane %v707_v51, %v2393_v7 }
 0x3fd   :  { %v713_v55 = vadd.f32 %v712_v50, %v711_v48 }
 0x3fe   :  { %v718_v57 = vsel %vm97_vm1, %v710_v53, 0.0  ;;  %v1719_v58 = vsel %vm639_vm2, %v1718_v54, %v1714_v52 }
 0x3ff   :  { %v714_v60 = vrot.slane %v713_v55, 2  ;;  %v719_v17 = vrot.slane %v718_v57, 4  ;;  %1721 = vst.msk [vmem:[#allocation12] sm:$0x3] %vm642_vm3, %v1719_v58 }
 0x401   :  { %v715_v59 = vadd.f32 %v714_v60, %v713_v55  ;;  %v720_v22 = vadd.f32 %v719_v17, %v718_v57 }
 0x403   :  { %v721_v29 = vrot.slane %v720_v22, 2  ;;  %v716_v61 = vrot.slane %v715_v59, 1 }
 0x405   :  { %v722_v63 = vadd.f32 %v721_v29, %v720_v22  ;;  %v717_v1 = vadd.f32 %v716_v61, %v715_v59 }
 0x407   :  { %v723_v12 = vrot.slane %v722_v63, 1 }
 0x409   :  { %v724_v2 = vadd.f32 %v723_v12, %v722_v63 }
 0x40b   :  { %v1220_v62 = vsel %vm639_vm2, %v724_v2, %v717_v1 }
 0x40c   :  { %v1221_v7 = vsel %vm97_vm1, %v1220_v62, 0 }
 0x40d   :  { %v1292_v4 = vand.u32 4294901760, %v1221_v7 }
 0x40f   :  { %v1293_v49 = vsub.f32 %v1221_v7, %v1292_v4  ;;  %1995 = vmatmul.mubr.f32.vlgmr.msra.gmra.mxu1 %v1292_v4 }
 0x410   :  { %2009 = vmatpush3.msra.mxu1 %v2478_v3  ;;  %2016 = vmatprep.mubr.msk.f32.mxu1 %vm2224_vm0, %v2223_v0 }
 0x411   :  { %2010 = vmatprep.subr.mxu1 %v2223_v0  ;;  %v1294_v10 = vand.u32 4294901760, %v1293_v49 }
 0x412   :  { %2011 = vmatpush3.msra.mxu1 %v2483_v56 }
 0x413   :  { %2012 = vmatprep.subr.mxu1 %v2223_v0  ;;  %v1295_v11 = vsub.f32 %v1293_v49, %v1294_v10 }
 0x414   :  { %2013 = vmatpush3.msra.mxu1 %v2491_v9 }
 0x415   :  { %2014 = vmatprep.subr.mxu1 %v2223_v0  ;;  %v1296_v16 = vand.u32 4294901760, %v1295_v11 }
 0x416   :  { %2015 = vmatpush3.msra.mxu1 %v2502_v15 }
 0x417   :  { %2017 = vmatmul.mubr.f32.vlgmr.msra.gmra.mxu1 %v1294_v10  ;;  %2030 = vmatprep.subr.mxu1 %v2223_v0 }
 0x418   :  { %1984 = vmatmul.mubr.f32.vlgmr.msra.gmra.mxu0 %v1296_v16  ;;  %2031 = vmatpush3.msra.mxu1 %v2478_v3 }
 0x419   :  { %1998 = vmatpush3.msra.mxu0 %v2481_v5  ;;  %2032 = vmatprep.subr.mxu1 %v2223_v0 }
 0x41a   :  { %1999 = vmatprep.subr.mxu0 %v2223_v0  ;;  %2033 = vmatpush3.msra.mxu1 %v2483_v56 }
 0x41b   :  { %2000 = vmatpush3.msra.mxu0 %v2489_v8  ;;  %2034 = vmatprep.subr.mxu1 %v2223_v0 }
 0x41c   :  { %2001 = vmatprep.subr.mxu0 %v2223_v0  ;;  %2035 = vmatpush3.msra.mxu1 %v2491_v9 }
 0x41d   :  { %2002 = vmatpush3.msra.mxu0 %v2500_v14  ;;  %2036 = vmatprep.subr.mxu1 %v2223_v0 }
 0x41e   :  { %2003 = vmatprep.subr.mxu0 %v2223_v0  ;;  %2005 = vmatprep.mubr.msk.f32.mxu0 %vm2224_vm0, %v2223_v0 }
 0x41f   :  { %2004 = vmatpush3.msra.mxu0 %v2511_v20  ;;  %2037 = vmatpush3.msra.mxu1 %v2502_v15 }
 0x420   :  { %2038 = vmatprep.mubr.msk.f32.mxu1 %vm2224_vm0, %v2223_v0  ;;  %2006 = vmatmul.mubr.f32.vlgmr.msra.gmra.mxu0 %v1293_v49 }
 0x421   :  { %2019 = vmatprep.subr.mxu0 %v2223_v0  ;;  %2039 = vmatmul.mubr.f32.vlgmr.msra.gmra.mxu1 %v1292_v4 }
 0x422   :  { %2020 = vmatpush3.msra.mxu0 %v1329_v6  ;;  %2027 = vmatprep.mubr.msk.f32.mxu0 %vm2224_vm0, %v2223_v0 }
 0x423   :  { %2021 = vmatprep.subr.mxu0 %v2223_v0 }
 0x424   :  { %2022 = vmatpush3.msra.mxu0 %v1336_v13 }
 0x425   :  { %2023 = vmatprep.subr.mxu0 %v2223_v0 }
 0x426   :  { %2024 = vmatpush3.msra.mxu0 %v1343_v19 }
 0x427   :  { %2025 = vmatprep.subr.mxu0 %v2223_v0 }
 0x428   :  { %2026 = vmatpush3.msra.mxu0 %v1350_v24 }
 0x429   :  { %2028 = vmatmul.mubr.f32.vlgmr.msra.gmra.mxu0 %v1292_v4 }
 0x42a   :  { %2177 = shalt.err (!%p2174_p1)
}
 0x42b   :  { %1741 = dma.vmem_to_hbm [thread:$0]  %s1739_s4, 32, %s2593_s6, [#allocation13]   ;;  %vm1709_vm4 = vcmask 254976  }
 0x42c   :  { %s2228_s6 = smov [#allocation11]  }
 0x42d   :  { %s1728_s24 = sshll.u32 %s2228_s6, 4  ;;  %s1729_s24 = int_to_ptr.vmem [resolvable:$true] %s1728_s24 }
 0x42e   :  { %s2186_s25 = scalar_lea.vmem %s1729_s24, 32  ;;  %p2191_p3 = scmp.lt.s32.totalorder %s1729_s24, %s1729_s24 }
 0x42f   :  { %p2187_p2 = scmp.ne.s32.totalorder %s1729_s24, %s2186_s25  ;;  %p2192_p4 = scmp.lt.s32.totalorder %s2186_s25, %s2186_s25 }
 0x431   :  { %p2193_p5 = por %p2192_p4, %p2191_p3 }
 0x433   :  { %p2194_p6 = pnand %p2193_p5, %p2187_p2 }
 0x4cf   :  { %v1389_v3 = vpop.f32.mrf.mxu1 }
 0x4d1   :  { %v1996_v0 = vpop.f32.mrf.mxu1 }
 0x4d7   :  { %v1546_v5 = vpop.f32.mrf.mxu1 }
 0x4d8   :  { %v1298_v56 = vpop.f32.mrf.mxu0 }
 0x4d9   :  { %v2018_v6 = vpop.f32.mrf.mxu1  ;;  %v1299_v9 = vadd.f32 %v1298_v56, %v2526_v44 }
 0x4da   :  { %v1985_v8 = vpop.f32.mrf.mxu0 }
 0x4db   :  { %v1390_v15 = vadd.f32 %v1389_v3, %v1299_v9 }
 0x4e0   :  { %v1469_v13 = vpop.f32.mrf.mxu0 }
 0x4e1   :  { %v1704_v14 = vpop.f32.mrf.mxu1  ;;  %v1470_v20 = vadd.f32 %v1469_v13, %v1390_v15 }
 0x4e2   :  { %v2007_v18 = vpop.f32.mrf.mxu0 }
 0x4e3   :  { %v2040_v19 = vpop.f32.mrf.mxu1  ;;  %v1547_v21 = vadd.f32 %v1546_v5, %v1470_v20 }
 0x4e9   :  { %v1629_v23 = vpop.f32.mrf.mxu0 }
 0x4ea   :  { %v1630_v24 = vadd.f32 %v1629_v23, %v1547_v21 }
 0x4eb   :  { %v2029_v25 = vpop.f32.mrf.mxu0 }
 0x4ec   :  { %v1705_v26 = vadd.f32 %v1704_v14, %v1630_v24 }
 0x4ee   :  { %2064 = vtanh.f32 %v1705_v26 }
 0x4fb   :  { %v2065_v27 = vpop.eup %2064 }
 0x4fc   :  { %1710 = vst.msk [vmem:[#allocation11] sm:$0x3] %vm1709_vm4, %v2065_v27 }
 0x4fd   :  { %2197 = shalt.err (!%p2194_p6)
}
 0x4fe   :  { %1731 = dma.vmem_to_hbm [thread:$0]  %s1729_s24, 32, %s2592_s5, [#allocation4]  }
 0x4ff   :  { %2212 = dma.done.wait [#allocation4], 32  }
 0x500   :  { %2213 = vsyncadd [#allocation4], 4294967264 }
 0x501   :  { %2214 = dma.done.wait [#allocation13], 32  }
 0x502   :  { %2215 = vsyncadd [#allocation13], 4294967264 }
 0x503   :  { %1748 = vsyncpa [#allocation3], 1 }
 0x504   :  { %1749 = vsyncpa [#allocation6], 1 }
 0x505   :  { %1750 = vsyncpa [#allocation9], 1 }
 0x506   :  { %1751 = vsyncpa [#allocation4], 1 }
 0x507   :  { %1752 = vsyncpa [#allocation13], 1 }

</bundles_post_ra>
